<compile_context>
chip_gen: v7x
topology: tpu7x:2x2x1
jax: 0.10.0
libtpu: 0.0.40
codegen_flags: <defaults>
</compile_context>

<pallas_src>
import jax
import jax.numpy as jnp
from jax.experimental import pallas as pl
from jax.experimental.pallas import tpu as pltpu

LANE = 128


def _round_up(x, m):
    return (x + m - 1) // m * m


def bandit_mlp_kernel(x_ref, w1_ref, b1_ref, w2_ref, b2_ref, w3_ref, b3_ref, o_ref):
    """Fused 3-layer MLP forward for one batch tile.
    Matmul operands are bf16 (MXU-native); accumulate + bias/ReLU stay f32
    (v5e VPU has no bf16 path)."""
    x = x_ref[...].astype(jnp.bfloat16)  # in-kernel cast, hidden under the x DMA
    h1 = jnp.dot(x, w1_ref[...], preferred_element_type=jnp.float32) + b1_ref[...]
    h1 = jnp.maximum(h1, 0.0).astype(jnp.bfloat16)
    h2 = jnp.dot(h1, w2_ref[...], preferred_element_type=jnp.float32) + b2_ref[...]
    h2 = jnp.maximum(h2, 0.0).astype(jnp.bfloat16)
    o_ref[...] = (
        jnp.dot(h2, w3_ref[...], preferred_element_type=jnp.float32) + b3_ref[...]
    ).astype(o_ref.dtype)


def prepare_bandit_params(w1, b1, w2, b2, w3, b3):
    """One-time parameter prep (NOT on the per-call forward path):
    zero-pad hidden/action dims to full 128-lane multiples and cast matmul
    weights to bf16. Exact: ReLU(0-columns)=0 and zero W3 rows contribute 0."""
    fc1, fc2, n_actions = w1.shape[1], w2.shape[1], w3.shape[1]
    fc1_p, fc2_p, na_p = (_round_up(d, LANE) for d in (fc1, fc2, n_actions))
    if fc1_p != fc1:
        w1 = jnp.pad(w1, ((0, 0), (0, fc1_p - fc1)))
        b1 = jnp.pad(b1, ((0, 0), (0, fc1_p - fc1)))
        w2 = jnp.pad(w2, ((0, fc1_p - fc1), (0, 0)))
    if fc2_p != fc2:
        w2 = jnp.pad(w2, ((0, 0), (0, fc2_p - fc2)))
        b2 = jnp.pad(b2, ((0, 0), (0, fc2_p - fc2)))
        w3 = jnp.pad(w3, ((0, fc2_p - fc2), (0, 0)))
    if na_p != n_actions:
        w3 = jnp.pad(w3, ((0, 0), (0, na_p - n_actions)))
        b3 = jnp.pad(b3, ((0, 0), (0, na_p - n_actions)))
    return (
        w1.astype(jnp.bfloat16), b1.astype(jnp.float32),
        w2.astype(jnp.bfloat16), b2.astype(jnp.float32),
        w3.astype(jnp.bfloat16), b3.astype(jnp.float32),
    )


def _pick_tile(batch: int) -> int:
    """Adaptive batch tile: >=2 grid steps whenever batch > 8 (so v7x's second
    TensorCore gets work via the "parallel" axis), <=2048 rows per tile (amortizes
    the ~0.35us per-grid-step pipeline overhead), 8-row (sublane) aligned so the
    final overhanging block wastes at most 7 rows. No batch padding is done."""
    if batch <= 8:
        return 8
    steps = max(2, pl.cdiv(batch, 2048))
    return _round_up(pl.cdiv(batch, steps), 8)


@jax.jit
def bandit_forward_padded(x, w1, b1, w2, b2, w3, b3):
    """Fused forward. Takes f32 x and bf16/padded params from
    prepare_bandit_params. Returns logits padded to a full 128-lane action dim;
    slice [:, :n_actions] at the consumer (a wrapper-side slice would re-read the
    whole output, nearly doubling output HBM traffic)."""
    batch, n_states = x.shape
    fc1_p = w1.shape[1]
    fc2_p = w2.shape[1]
    na_p = w3.shape[1]

    tb = _pick_tile(batch)
    grid = (pl.cdiv(batch, tb),)  # last block may overhang; OOB output rows are masked

    flops = 2 * batch * (n_states * fc1_p + fc1_p * fc2_p + fc2_p * na_p)
    bytes_accessed = (
        4 * x.size
        + 2 * (w1.size + w2.size + w3.size)
        + 4 * (b1.size + b2.size + b3.size)
        + 4 * batch * na_p
    )

    return pl.pallas_call(
        bandit_mlp_kernel,
        out_shape=jax.ShapeDtypeStruct((batch, na_p), jnp.float32),
        grid_spec=pltpu.PrefetchScalarGridSpec(
            num_scalar_prefetch=0,
            grid=grid,
            in_specs=[
                pl.BlockSpec((tb, n_states), lambda i: (i, 0)),   # x tile (f32 in)
                pl.BlockSpec((n_states, fc1_p), lambda i: (0, 0)),  # weights/biases:
                pl.BlockSpec((1, fc1_p), lambda i: (0, 0)),         #   constant index
                pl.BlockSpec((fc1_p, fc2_p), lambda i: (0, 0)),     #   maps -> stay
                pl.BlockSpec((1, fc2_p), lambda i: (0, 0)),         #   VMEM-resident
                pl.BlockSpec((fc2_p, na_p), lambda i: (0, 0)),      #   across tiles
                pl.BlockSpec((1, na_p), lambda i: (0, 0)),
            ],
            out_specs=pl.BlockSpec((tb, na_p), lambda i: (i, 0)),
        ),
        compiler_params=pltpu.CompilerParams(
            # Batch tiles are independent -> shard grid steps across v7x's 2
            # TensorCores (no effect on single-TC v5e/v6e). Even the largest
            # (2048-row) double-buffered tiles stay far under the scoped VMEM
            # default and v7x's 64 MiB physical VMEM.
            dimension_semantics=("parallel",),
        ),
        cost_estimate=pl.CostEstimate(
            flops=flops, transcendentals=0, bytes_accessed=bytes_accessed
        ),
    )(x, w1, b1, w2, b2, w3, b3)


def bandit_forward(x, w1, b1, w2, b2, w3, b3, n_actions):
    """Convenience wrapper matching BanditNetwork.forward()'s output shape.
    Prefer consuming bandit_forward_padded directly and slicing at the consumer."""
    return bandit_forward_padded(x, w1, b1, w2, b2, w3, b3)[:, :n_actions]


def init_linear(key, fan_in, fan_out):
    """Deterministic PyTorch-style uniform(-1/sqrt(fan_in), 1/sqrt(fan_in)) init."""
    kw, kb = jax.random.split(key)
    bound = 1.0 / jnp.sqrt(jnp.float32(fan_in))
    w = jax.random.uniform(kw, (fan_in, fan_out), jnp.float32, -bound, bound)
    b = jax.random.uniform(kb, (1, fan_out), jnp.float32, -bound, bound)
    return w, b


if __name__ == "__main__":
    # BanditNetwork(n_states=32, n_actions=8, fc1_dims=128, fc2_dims=64).
    # batch=512 exercises the batch grid (2 tiles of 256) while staying small/fast.
    batch, n_states, n_actions = 512, 32, 8
    fc1_dims, fc2_dims = 128, 64

    key = jax.random.PRNGKey(0)
    kx, k1, k2, k3 = jax.random.split(key, 4)

    x = jax.random.normal(kx, (batch, n_states), jnp.float32)
    w1, b1 = init_linear(k1, n_states, fc1_dims)
    w2, b2 = init_linear(k2, fc1_dims, fc2_dims)
    w3, b3 = init_linear(k3, fc2_dims, n_actions)

    # One-time prep (off the hot path): pad fc2/n_actions to 128 lanes, cast to bf16.
    params = prepare_bandit_params(w1, b1, w2, b2, w3, b3)

    out_padded = bandit_forward_padded(x, *params)
    out_padded = jax.block_until_ready(out_padded)
    out = out_padded[:, :n_actions]  # slice at the consumer

    # Pure-JAX f32 reference (tolerance relaxed for bf16 MXU operands).
    h1 = jnp.maximum(x @ w1 + b1, 0.0)
    h2 = jnp.maximum(h1 @ w2 + b2, 0.0)
    ref = h2 @ w3 + b3
    assert out.shape == (batch, n_actions)
    assert jnp.allclose(out, ref, atol=5e-2, rtol=5e-2), float(jnp.abs(out - ref).max())

    # TODO(synk): choose_action's categorical sampling, softmax, and learn()'s
    # Adam/CrossEntropy training step are host-side / autodiff logic, not part of
    # the forward kernel.
    print("KERNEL_OK")
</pallas_src>

<mosaic_0001>
module attributes {stable_mosaic.version = 11 : i64} {
  func.func @bandit_mlp_kernel(%arg0: i32, %arg1: memref<256x32xf32, #tpu.memory_space<vmem>>, %arg2: memref<32x128xbf16, #tpu.memory_space<vmem>>, %arg3: memref<1x128xf32, #tpu.memory_space<vmem>>, %arg4: memref<128x128xbf16, #tpu.memory_space<vmem>>, %arg5: memref<1x128xf32, #tpu.memory_space<vmem>>, %arg6: memref<128x128xbf16, #tpu.memory_space<vmem>>, %arg7: memref<1x128xf32, #tpu.memory_space<vmem>>, %arg8: memref<256x128xf32, #tpu.memory_space<vmem>>) attributes {dimension_semantics = [#tpu.dimension_semantics<parallel>], iteration_bounds = array<i64: 2>, scalar_prefetch = 0 : i64, scratch_operands = 0 : i64, tpu.core_type = #tpu.core_type<tc>, window_params = [{transform_indices = @transform_0, window_bounds = array<i64: 256, 32>}, {pipeline_mode = #tpu.pipeline_mode<synchronous>, transform_indices = @transform_1, window_bounds = array<i64: 32, 128>}, {pipeline_mode = #tpu.pipeline_mode<synchronous>, transform_indices = @transform_2, window_bounds = array<i64: 1, 128>}, {pipeline_mode = #tpu.pipeline_mode<synchronous>, transform_indices = @transform_3, window_bounds = array<i64: 128, 128>}, {pipeline_mode = #tpu.pipeline_mode<synchronous>, transform_indices = @transform_4, window_bounds = array<i64: 1, 128>}, {pipeline_mode = #tpu.pipeline_mode<synchronous>, transform_indices = @transform_5, window_bounds = array<i64: 128, 128>}, {pipeline_mode = #tpu.pipeline_mode<synchronous>, transform_indices = @transform_6, window_bounds = array<i64: 1, 128>}, {transform_indices = @transform_7, window_bounds = array<i64: 256, 128>}]} {
    %c0 = arith.constant 0 : index
    %c0_0 = arith.constant 0 : index
    %0 = vector.load %arg1[%c0, %c0_0] : memref<256x32xf32, #tpu.memory_space<vmem>>, vector<256x32xf32>
    %1 = arith.truncf %0 : vector<256x32xf32> to vector<256x32xbf16>
    %c0_1 = arith.constant 0 : index
    %c0_2 = arith.constant 0 : index
    %2 = vector.load %arg2[%c0_1, %c0_2] : memref<32x128xbf16, #tpu.memory_space<vmem>>, vector<32x128xbf16>
    %cst = arith.constant dense<0.000000e+00> : vector<256x128xf32>
    %3 = tpu.matmul %1, %2, %cst {dimension_numbers = #tpu.dot_dimension_numbers<[1], [0], [0], [1], [0, 0, 1, 1], [], []>} : vector<256x32xbf16>, vector<32x128xbf16>, vector<256x128xf32> -> vector<256x128xf32>
    %c0_3 = arith.constant 0 : index
    %c0_4 = arith.constant 0 : index
    %4 = vector.load %arg3[%c0_3, %c0_4] : memref<1x128xf32, #tpu.memory_space<vmem>>, vector<1x128xf32>
    %5 = vector.broadcast %4 : vector<1x128xf32> to vector<256x128xf32>
    %6 = arith.addf %3, %5 : vector<256x128xf32>
    %cst_5 = arith.constant 0.000000e+00 : f32
    %7 = vector.broadcast %cst_5 : f32 to vector<256x128xf32>
    %8 = arith.maximumf %6, %7 : vector<256x128xf32>
    %9 = arith.truncf %8 : vector<256x128xf32> to vector<256x128xbf16>
    %c0_6 = arith.constant 0 : index
    %c0_7 = arith.constant 0 : index
    %10 = vector.load %arg4[%c0_6, %c0_7] : memref<128x128xbf16, #tpu.memory_space<vmem>>, vector<128x128xbf16>
    %cst_8 = arith.constant dense<0.000000e+00> : vector<256x128xf32>
    %11 = tpu.matmul %9, %10, %cst_8 {dimension_numbers = #tpu.dot_dimension_numbers<[1], [0], [0], [1], [0, 0, 1, 1], [], []>} : vector<256x128xbf16>, vector<128x128xbf16>, vector<256x128xf32> -> vector<256x128xf32>
    %c0_9 = arith.constant 0 : index
    %c0_10 = arith.constant 0 : index
    %12 = vector.load %arg5[%c0_9, %c0_10] : memref<1x128xf32, #tpu.memory_space<vmem>>, vector<1x128xf32>
    %13 = vector.broadcast %12 : vector<1x128xf32> to vector<256x128xf32>
    %14 = arith.addf %11, %13 : vector<256x128xf32>
    %cst_11 = arith.constant 0.000000e+00 : f32
    %15 = vector.broadcast %cst_11 : f32 to vector<256x128xf32>
    %16 = arith.maximumf %14, %15 : vector<256x128xf32>
    %17 = arith.truncf %16 : vector<256x128xf32> to vector<256x128xbf16>
    %c0_12 = arith.constant 0 : index
    %c0_13 = arith.constant 0 : index
    %18 = vector.load %arg6[%c0_12, %c0_13] : memref<128x128xbf16, #tpu.memory_space<vmem>>, vector<128x128xbf16>
    %cst_14 = arith.constant dense<0.000000e+00> : vector<256x128xf32>
    %19 = tpu.matmul %17, %18, %cst_14 {dimension_numbers = #tpu.dot_dimension_numbers<[1], [0], [0], [1], [0, 0, 1, 1], [], []>} : vector<256x128xbf16>, vector<128x128xbf16>, vector<256x128xf32> -> vector<256x128xf32>
    %c0_15 = arith.constant 0 : index
    %c0_16 = arith.constant 0 : index
    %20 = vector.load %arg7[%c0_15, %c0_16] : memref<1x128xf32, #tpu.memory_space<vmem>>, vector<1x128xf32>
    %21 = vector.broadcast %20 : vector<1x128xf32> to vector<256x128xf32>
    %22 = arith.addf %19, %21 : vector<256x128xf32>
    %c0_17 = arith.constant 0 : index
    %c0_18 = arith.constant 0 : index
    %23 = vector.load %arg8[%c0_17, %c0_18] : memref<256x128xf32, #tpu.memory_space<vmem>>, vector<256x128xf32>
    tpu.vector_store %arg8[%c0_17, %c0_18], %22 {strides = array<i32>} : memref<256x128xf32, #tpu.memory_space<vmem>>, vector<256x128xf32>,
    return
  }
  func.func @transform_0(%arg0: i32) -> (i32, i32) {
    %c0_i32 = arith.constant 0 : i32
    %c0_i32_0 = arith.constant 0 : i32
    return %arg0, %c0_i32 : i32, i32
  }
  func.func @transform_1(%arg0: i32) -> (i32, i32) {
    %c0_i32 = arith.constant 0 : i32
    %c0_i32_0 = arith.constant 0 : i32
    %c0_i32_1 = arith.constant 0 : i32
    return %c0_i32, %c0_i32_0 : i32, i32
  }
  func.func @transform_2(%arg0: i32) -> (i32, i32) {
    %c0_i32 = arith.constant 0 : i32
    %c0_i32_0 = arith.constant 0 : i32
    %c0_i32_1 = arith.constant 0 : i32
    return %c0_i32, %c0_i32_0 : i32, i32
  }
  func.func @transform_3(%arg0: i32) -> (i32, i32) {
    %c0_i32 = arith.constant 0 : i32
    %c0_i32_0 = arith.constant 0 : i32
    %c0_i32_1 = arith.constant 0 : i32
    return %c0_i32, %c0_i32_0 : i32, i32
  }
  func.func @transform_4(%arg0: i32) -> (i32, i32) {
    %c0_i32 = arith.constant 0 : i32
    %c0_i32_0 = arith.constant 0 : i32
    %c0_i32_1 = arith.constant 0 : i32
    return %c0_i32, %c0_i32_0 : i32, i32
  }
  func.func @transform_5(%arg0: i32) -> (i32, i32) {
    %c0_i32 = arith.constant 0 : i32
    %c0_i32_0 = arith.constant 0 : i32
    %c0_i32_1 = arith.constant 0 : i32
    return %c0_i32, %c0_i32_0 : i32, i32
  }
  func.func @transform_6(%arg0: i32) -> (i32, i32) {
    %c0_i32 = arith.constant 0 : i32
    %c0_i32_0 = arith.constant 0 : i32
    %c0_i32_1 = arith.constant 0 : i32
    return %c0_i32, %c0_i32_0 : i32, i32
  }
  func.func @transform_7(%arg0: i32) -> (i32, i32) {
    %c0_i32 = arith.constant 0 : i32
    %c0_i32_0 = arith.constant 0 : i32
    return %arg0, %c0_i32 : i32, i32
  }
}

</mosaic_0001>

<bundles_post_ra>
// kernel: bandit_forward_padded.1
= control target key start
LH: loop header
LB: loop body
LE: loop exit
PB: predicated region body
PF: predicated region fallthrough
CT: control target
= control target key end

     0   :  { %12 = vsyncpa [#allocation3], 0  ;;  %s2010_s0 = inlined_call_operand.vmem [shape: f32[512,32], index: 0, kind: input, shape index: {}]   ;;  %s2011_s1 = inlined_call_operand.vmem [shape: bf16[32,128], index: 1, kind: input, shape index: {}]   ;;  %s2012_s2 = inlined_call_operand.vmem [shape: f32[1,128], index: 2, kind: input, shape index: {}]   ;;  %s2013_s3 = inlined_call_operand.vmem [shape: bf16[128,128], index: 3, kind: input, shape index: {}]   ;;  %s2014_s4 = inlined_call_operand.vmem [shape: f32[1,128], index: 4, kind: input, shape index: {}]   ;;  %s2015_s5 = inlined_call_operand.vmem [shape: bf16[128,128], index: 5, kind: input, shape index: {}]   ;;  %s2016_s6 = inlined_call_operand.vmem [shape: f32[1,128], index: 6, kind: input, shape index: {}]   ;;  %s2017_s7 = inlined_call_operand.hbm [shape: f32[512,128], index: 7, kind: output, shape index: {}]  }
   0x1   :  { %14 = vsyncpa [#allocation3 + $0x1], 0  ;;  %s1648_s24 = smov 0   ;;  %s1650_s25 = smov 0  }
   0x2   :  { %s1652_s26 = smov 0   ;;  %s1654_s27 = smov 0  }
   0x3 LB: > { %s1669_s28 = sadd.s32 4294967295, %s1603_s27   ;;  %s1230_s29 = sadd.s32 4294967294, %s1603_s27   ;;  %s1603_s27 = sphi %s1654_s27, %s2023_s27   ;;  %s1599_s26 = sphi %s1652_s26, %s2022_s26   ;;  %s1595_s25 = sphi %s1650_s25, %s2021_s25   ;;  %s1591_s24 = sphi %s1648_s24, %s2020_s24  }
   0x4   : > { %s1673_s30 = sadd.s32 1, %s1603_s27   ;;  %s179_s8 = sadd.s32 1, %s1599_s26 }
   0x5   : > { %s176_s9 = ssub.s32 %s1603_s27, %s1673_s30  ;;  %p189_p0 = scmp.ne.s32.totalorder %s1599_s26, %s1595_s25 }
   0x6   : > { %p177_p1 = scmp.eq.s32.totalorder %s176_s9, 0  ;;  %p190_p2 = scmp.eq.s32.totalorder %s1669_s28, 1 }
   0x7   : > { %p195_p3 = scmp.ne.s32.totalorder %s1595_s25, %s1591_s24  ;;  %p196_p4 = scmp.eq.s32.totalorder %s1230_s29, 1 }
   0x8   : > { %s1684_s10 = scalar_select %p177_p1, %s1599_s26, %s179_s8  }
   0x9   : > { %p1686_p5 = por %p190_p2, %p189_p0  ;;  %p1690_p6 = por %p196_p4, %p195_p3 }
   0xa   : > { %p1233_p7 = scmp.ge.s32.totalorder %s1603_s27, 1  ;;  %p241_p8 = scmp.lt.s32.totalorder %s1603_s27, 3 }
   0xc   : > { %p242_p9 = pnand %p1233_p7, %p241_p8 }
   0xd   : > { %v1523_v0 = vld [vmem:[%s2011_s1] sm:$0xff] (!%p242_p9)   ;;  %s1235_s15 = sshll.u32 (!%p242_p9), %s1669_s28, 5  ;;  %v1524_v1 = vld [vmem:[%s2011_s1 + $0x8] sm:$0xff] (!%p242_p9)   ;;  %vm352_vm0 = vcmask (!%p242_p9), 261120   ;;  %v1527_v29 = vld [vmem:[%s2013_s3 + $0x10] sm:$0xff] (!%p242_p9)   ;;  %s270_s16 = sand.u32 (!%p242_p9), 1, %s1595_s25  }
   0xe   : > { %245 = sbr.rel (%p242_p9) target bundleno = 760 (0x2f8), region = 48  ;;  %p274_p10 = scmp.lt.s32.totalorder (!%p242_p9), %s1235_s15, 63  ;;  %1346 = vmatprep.subr.bf16.mxu0 (!%p242_p9), %v1523_v0  ;;  %1478 = vmatprep.subr.bf16.mxu1 (!%p242_p9), %v1523_v0  ;;  %v1525_v2 = vld [vmem:[%s2013_s3] sm:$0xff] (!%p242_p9)   ;;  %v1526_v24 = vld [vmem:[%s2013_s3 + $0x8] sm:$0xff] (!%p242_p9)   ;;  %v1528_v38 = vld [vmem:[%s2013_s3 + $0x18] sm:$0xff] (!%p242_p9)  }
   0xf   : > { %1347 = vmatpush3.bf16.msra.mxu0 (!%p242_p9), %v1523_v0  ;;  %1480 = vmatpush3.bf16.msra.mxu1 (!%p242_p9), %v1523_v0  ;;  %v1529_v46 = vld [vmem:[%s2013_s3 + $0x20] sm:$0xff] (!%p242_p9)   ;;  %v1530_v51 = vld [vmem:[%s2013_s3 + $0x28] sm:$0xff] (!%p242_p9)   ;;  %v1531_v56 = vld [vmem:[%s2013_s3 + $0x30] sm:$0xff] (!%p242_p9)   ;;  %s1234_s17 = sshll.u32 (!%p242_p9), %s270_s16, 8  ;;  %s1279_s21 = sshll.u32 (!%p242_p9), %s1669_s28, 12 }
  0x10   : > { %1348 = vmatprep.subr.bf16.mxu0 (!%p242_p9), %v1524_v1  ;;  %1479 = vmatprep.subr.bf16.mxu1 (!%p242_p9), %v1524_v1  ;;  %v1532_v57 = vld [vmem:[%s2013_s3 + $0x38] sm:$0xff] (!%p242_p9)   ;;  %v1533_v58 = vld [vmem:[%s2015_s5] sm:$0xff] (!%p242_p9)   ;;  %v1534_v59 = vld [vmem:[%s2015_s5 + $0x8] sm:$0xff] (!%p242_p9)   ;;  %s1959_s8 = scalar_lea.hbm (!%p242_p9), %s2017_s7, %s1279_s21  ;;  %s1969_s28 = scalar_lea.sflag (!%p242_p9), [#allocation3], %s270_s16 }
  0x11   : > { %v1535_v60 = vld [vmem:[%s2015_s5 + $0x10] sm:$0xff] (!%p242_p9)   ;;  %v1536_v61 = vld [vmem:[%s2015_s5 + $0x18] sm:$0xff] (!%p242_p9)   ;;  %v1537_v62 = vld [vmem:[%s2015_s5 + $0x20] sm:$0xff] (!%p242_p9)   ;;  %s1605_s13 = smov (!%p242_p9), [#allocation2]  }
  0x12   : > { %v1538_v63 = vld [vmem:[%s2015_s5 + $0x28] sm:$0xff] (!%p242_p9)   ;;  %v1801_v0 = vld [vmem:[%s2012_s2] ss:$0 sm:$0xff] (!%p242_p9)  ;;  %s1545_s14 = sshll.u32 (!%p242_p9), %s1605_s13, 4  ;;  %s1546_s14 = int_to_ptr.vmem [resolvable:$false] %s1545_s14 }
  0x13   : > { %1349 = vmatpush3.bf16.msra.mxu0 (!%p242_p9), %v1524_v1  ;;  %1481 = vmatpush3.bf16.msra.mxu1 (!%p242_p9), %v1524_v1 }
  0x14   : > { %1382 = vmatprep.subr.bf16.mxu1 (!%p242_p9), %v1525_v2  ;;  %1430 = vmatprep.subr.bf16.mxu0 (!%p242_p9), %v1533_v58 }
  0x15   : > { %s2025_s15 = smov (!%p274_p10, %s1235_s15), 63 }
  0x16   : > { %s1236_s20 = sshll.u32 %s2025_s15, 3  ;;  %s1547_s15 = scalar_lea.vmem %s1546_s14, 8192 }
  0x17   : > { %s1709_s23 = scalar_lea.vmem %s2010_s0, %s1236_s20  ;;  %s1894_s20 = scalar_lea.vmem [#allocation2], %s1234_s17 }
  0x18   : > { %v281_v3 = vld [vmem:[%s1709_s23] sm:$0xff]  ;;  %v282_v4 = vld [vmem:[%s1709_s23 + $0x8] sm:$0xff]  ;;  %v283_v5 = vld [vmem:[%s1709_s23 + $0x10] sm:$0xff]  ;;  %s1168_s22 = sshll.u32 %s1894_s20, 4  ;;  %s1961_s22 = int_to_ptr.vmem [resolvable:$true] %s1168_s22 }
  0x19   : > { %v313_v6 = vpack.c.bf16 %v282_v4, %v281_v3  ;;  %v284_v7 = vld [vmem:[%s1709_s23 + $0x18] sm:$0xff]  ;;  %v285_v8 = vld [vmem:[%s1709_s23 + $0x20] sm:$0xff]  ;;  %v286_v9 = vld [vmem:[%s1709_s23 + $0x28] sm:$0xff]  ;;  %s1541_s9 = scalar_lea.vmem %s1961_s22, 4096  ;;  %p1548_p0 = scmp.lt.s32.totalorder %s1961_s22, %s1546_s14 }
  0x1a   : > { %v314_v10 = vpack.c.bf16 %v284_v7, %v283_v5  ;;  %v315_v11 = vpack.c.bf16 %v286_v9, %v285_v8  ;;  %v287_v12 = vld [vmem:[%s1709_s23 + $0x30] sm:$0xff]  ;;  %v288_v13 = vld [vmem:[%s1709_s23 + $0x38] sm:$0xff]  ;;  %v289_v14 = vld [vmem:[%s1709_s23 + $0x40] sm:$0xff]  ;;  %p1542_p11 = scmp.ne.s32.totalorder %s1961_s22, %s1541_s9  ;;  %p1549_p1 = scmp.lt.s32.totalorder %s1547_s15, %s1541_s9 }
  0x1b   : > { %1350 = vmatprep.mubr.msk.bf16.mxu0 %vm352_vm0, %v313_v6  ;;  %v290_v15 = vld [vmem:[%s1709_s23 + $0x48] sm:$0xff]  ;;  %v297_v16 = vld [vmem:[%s1709_s23 + $0x80] sm:$0xff]  ;;  %v299_v19 = vld [vmem:[%s1709_s23 + $0x90] sm:$0xff]  ;;  %v316_v25 = vpack.c.bf16 %v288_v13, %v287_v12 }
  0x1c   : > { %1351 = vmatmul.mubr.msk.bf16.vlgmr.msra.gmra.mrb[0].mxu0 %vm352_vm0, %v314_v10  ;;  %v298_v17 = vld [vmem:[%s1709_s23 + $0x88] sm:$0xff]  ;;  %v300_v20 = vld [vmem:[%s1709_s23 + $0x98] sm:$0xff]  ;;  %v301_v21 = vld [vmem:[%s1709_s23 + $0xa0] sm:$0xff]  ;;  %v317_v27 = vpack.c.bf16 %v290_v15, %v289_v14  ;;  %p1543_p12 = pnand %p1542_p11, %p1686_p5  ;;  %p1550_p2 = por %p1549_p1, %p1548_p0 }
  0x1d   : > { %1354 = vmatprep.mubr.msk.bf16.mxu0 %vm352_vm0, %v315_v11  ;;  %v321_v18 = vpack.c.bf16 %v298_v17, %v297_v16  ;;  %v322_v22 = vpack.c.bf16 %v300_v20, %v299_v19  ;;  %v302_v23 = vld [vmem:[%s1709_s23 + $0xa8] sm:$0xff]  ;;  %v303_v28 = vld [vmem:[%s1709_s23 + $0xb0] sm:$0xff]  ;;  %v304_v30 = vld [vmem:[%s1709_s23 + $0xb8] sm:$0xff]  ;;  %1431 = vmatpush3.bf16.msra.mxu0 %v1533_v58 }
  0x1e   : > { %v323_v26 = vpack.c.bf16 %v302_v23, %v301_v21  ;;  %v305_v31 = vld [vmem:[%s1709_s23 + $0xc0] sm:$0xff]  ;;  %v291_v32 = vld [vmem:[%s1709_s23 + $0x50] sm:$0xff]  ;;  %v292_v33 = vld [vmem:[%s1709_s23 + $0x58] sm:$0xff]  ;;  %v324_v37 = vpack.c.bf16 %v304_v30, %v303_v28  ;;  %1432 = vmatprep.subr.bf16.mxu0 %v1534_v59  ;;  %p1544_p13 = pneg %p1543_p12 }
  0x1f   : > { %1366 = vmatprep.mubr.msk.bf16.mxu1 %vm352_vm0, %v321_v18  ;;  %v306_v34 = vld [vmem:[%s1709_s23 + $0xc8] sm:$0xff]  ;;  %v293_v35 = vld [vmem:[%s1709_s23 + $0x60] sm:$0xff]  ;;  %v318_v40 = vpack.c.bf16 %v292_v33, %v291_v32  ;;  %v307_v42 = vld [vmem:[%s1709_s23 + $0xd0] sm:$0xff] }
  0x20   : > { %1367 = vmatmul.mubr.msk.bf16.vlgmr.msra.gmra.mrb[0].mxu1 %vm352_vm0, %v322_v22  ;;  %v294_v36 = vld [vmem:[%s1709_s23 + $0x68] sm:$0xff]  ;;  %v325_v39 = vpack.c.bf16 %v306_v34, %v305_v31  ;;  %v308_v43 = vld [vmem:[%s1709_s23 + $0xd8] sm:$0xff]  ;;  %v309_v44 = vld [vmem:[%s1709_s23 + $0xe0] sm:$0xff]  ;;  %p1551_p3 = pnand %p1550_p2, %p1544_p13 }
  0x21   : > { %1370 = vmatprep.mubr.msk.bf16.mxu1 %vm352_vm0, %v323_v26  ;;  %1383 = vmatpush3.bf16.msra.mxu1 %v1525_v2  ;;  %v319_v41 = vpack.c.bf16 %v294_v36, %v293_v35  ;;  %v310_v45 = vld [vmem:[%s1709_s23 + $0xe8] sm:$0xff]  ;;  %v295_v47 = vld [vmem:[%s1709_s23 + $0x70] sm:$0xff]  ;;  %v296_v48 = vld [vmem:[%s1709_s23 + $0x78] sm:$0xff]  ;;  %v326_v49 = vpack.c.bf16 %v308_v43, %v307_v42 }
  0x22   : > { %1384 = vmatprep.subr.bf16.mxu1 %v1526_v24  ;;  %v327_v50 = vpack.c.bf16 %v310_v45, %v309_v44  ;;  %v320_v52 = vpack.c.bf16 %v296_v48, %v295_v47  ;;  %v311_v53 = vld [vmem:[%s1709_s23 + $0xf0] sm:$0xff]  ;;  %v312_v54 = vld [vmem:[%s1709_s23 + $0xf8] sm:$0xff]  ;;  %1433 = vmatpush3.bf16.msra.mxu0 %v1534_v59 }
  0x23   : > { %v328_v55 = vpack.c.bf16 %v312_v54, %v311_v53  ;;  %1434 = vmatprep.subr.bf16.mxu0 %v1535_v60 }
  0x24   : > { %1355 = vmatmul.mubr.msk.bf16.gmra.mrb[4].mxu0 %vm352_vm0, %v316_v25 }
  0x25   : > { %1358 = vmatprep.mubr.msk.bf16.mxu0 %vm352_vm0, %v317_v27  ;;  %1385 = vmatpush3.bf16.msra.mxu1 %v1526_v24 }
  0x26   : > { %1386 = vmatprep.subr.bf16.mxu1 %v1527_v29  ;;  %1435 = vmatpush3.bf16.msra.mxu0 %v1535_v60 }
  0x27   : > { %1436 = vmatprep.subr.bf16.mxu0 %v1536_v61 }
  0x28   : > { %1371 = vmatmul.mubr.msk.bf16.gmra.mrb[4].mxu1 %vm352_vm0, %v324_v37 }
  0x29   : > { %1374 = vmatprep.mubr.msk.bf16.mxu1 %vm352_vm0, %v325_v39  ;;  %1387 = vmatpush3.bf16.msra.mxu1 %v1527_v29 }
  0x2a   : > { %1388 = vmatprep.subr.bf16.mxu1 %v1528_v38  ;;  %1437 = vmatpush3.bf16.msra.mxu0 %v1536_v61 }
  0x2b   : > { %1438 = vmatprep.subr.bf16.mxu0 %v1537_v62 }
  0x2c   : > { %1359 = vmatmul.mubr.msk.bf16.gmra.mrb[8].mxu0 %vm352_vm0, %v318_v40 }
  0x2d   : > { %1362 = vmatprep.mubr.msk.bf16.mxu0 %vm352_vm0, %v319_v41  ;;  %1389 = vmatpush3.bf16.msra.mxu1 %v1528_v38 }
  0x2e   : > { %1390 = vmatprep.subr.bf16.mxu1 %v1529_v46  ;;  %1439 = vmatpush3.bf16.msra.mxu0 %v1537_v62 }
  0x2f   : > { %1440 = vmatprep.subr.bf16.mxu0 %v1538_v63 }
  0x30   : > { %1375 = vmatmul.mubr.msk.bf16.gmra.mrb[8].mxu1 %vm352_vm0, %v326_v49 }
  0x31   : > { %1378 = vmatprep.mubr.msk.bf16.mxu1 %vm352_vm0, %v327_v50  ;;  %1391 = vmatpush3.bf16.msra.mxu1 %v1529_v46 }
  0x32   : > { %1392 = vmatprep.subr.bf16.mxu1 %v1530_v51  ;;  %1441 = vmatpush3.bf16.msra.mxu0 %v1538_v63 }
  0x34   : > { %1363 = vmatmul.mubr.msk.bf16.gmra.mrb[12].mxu0 %vm352_vm0, %v320_v52 }
  0x35   : > { %1393 = vmatpush3.bf16.msra.mxu1 %v1530_v51 }
  0x36   : > { %1394 = vmatprep.subr.bf16.mxu1 %v1531_v56 }
  0x38   : > { %1379 = vmatmul.mubr.msk.bf16.gmra.mrb[12].mxu1 %vm352_vm0, %v328_v55 }
  0x39   : > { %1395 = vmatpush3.bf16.msra.mxu1 %v1531_v56 }
  0x3a   : > { %1396 = vmatprep.subr.bf16.mxu1 %v1532_v57 }
  0x3d   : > { %1397 = vmatpush3.bf16.msra.mxu1 %v1532_v57 }
  0xef   : > { %v1352_v1 = vpop.f32.mrb[0].mxu0 }
  0xf0   : > { %v444_v2 = vadd.f32 %v1352_v1, %v1801_v0  ;;  %v435_v3 = vpop.f32.mrb[1].mxu0 }
  0xf1   : > { %v436_v4 = vadd.f32 %v1801_v0, %v435_v3  ;;  %v1353_v5 = vpop.f32.mrb[2].mxu0 }
  0xf2   : > { %v447_v6 = vadd.f32 %v1353_v5, %v1801_v0  ;;  %v438_v7 = vpop.f32.mrb[3].mxu0  ;;  %v564_v9 = vmax.f32 %v444_v2, 0.0 }
  0xf3   : > { %v439_v8 = vadd.f32 %v1801_v0, %v438_v7  ;;  %v1368_v11 = vpop.f32.mrb[0].mxu1  ;;  %v562_v12 = vmax.f32 %v436_v4, 0.0 }
  0xf4   : > { %v565_v10 = vmax.f32 %v447_v6, 0.0  ;;  %v508_v14 = vadd.f32 %v1368_v11, %v1801_v0  ;;  %v499_v15 = vpop.f32.mrb[1].mxu1 }
  0xf5   : > { %v563_v13 = vmax.f32 %v439_v8, 0.0  ;;  %v500_v17 = vadd.f32 %v1801_v0, %v499_v15  ;;  %v1369_v18 = vpop.f32.mrb[2].mxu1 }
  0xf6   : > { %v595_v16 = vpack.c.bf16 %v565_v10, %v564_v9  ;;  %v580_v21 = vmax.f32 %v508_v14, 0.0  ;;  %v511_v22 = vadd.f32 %v1369_v18, %v1801_v0  ;;  %v502_v23 = vpop.f32.mrb[3].mxu1 }
  0xf7   : > { %v594_v19 = vpack.c.bf16 %v563_v13, %v562_v12  ;;  %v1356_v20 = vpop.f32.mrb[4].mxu0  ;;  %v578_v26 = vmax.f32 %v500_v17, 0.0  ;;  %v503_v27 = vadd.f32 %v1801_v0, %v502_v23 }
  0xf8   : > { %v460_v24 = vadd.f32 %v1356_v20, %v1801_v0  ;;  %v451_v25 = vpop.f32.mrb[5].mxu0  ;;  %v581_v30 = vmax.f32 %v511_v22, 0.0 }
  0xf9   : > { %v452_v28 = vadd.f32 %v1801_v0, %v451_v25  ;;  %v1357_v29 = vpop.f32.mrb[6].mxu0  ;;  %1398 = vmatprep.mubr.bf16.mxu1 %v594_v19  ;;  %v579_v33 = vmax.f32 %v503_v27, 0.0 }
  0xfa   : > { %v463_v31 = vadd.f32 %v1357_v29, %v1801_v0  ;;  %v454_v32 = vpop.f32.mrb[7].mxu0  ;;  %1399 = vmatmul.mubr.bf16.vlgmr.msra.gmra.mrb[16].mxu1 %v595_v16  ;;  %v1815_v35 = vpack.c.bf16 %v581_v30, %v580_v21  ;;  %v568_v36 = vmax.f32 %v460_v24, 0.0 }
  0xfb   : > { %v455_v34 = vadd.f32 %v1801_v0, %v454_v32  ;;  %v1817_v38 = vpack.c.bf16 %v579_v33, %v578_v26  ;;  %v1372_v39 = vpop.f32.mrb[4].mxu1  ;;  %v566_v40 = vmax.f32 %v452_v28, 0.0 }
  0xfc   : > { %v569_v37 = vmax.f32 %v463_v31, 0.0  ;;  %v524_v42 = vadd.f32 %v1372_v39, %v1801_v0  ;;  %v515_v43 = vpop.f32.mrb[5].mxu1 }
  0xfd   : > { %v567_v41 = vmax.f32 %v455_v34, 0.0  ;;  %v516_v45 = vadd.f32 %v1801_v0, %v515_v43  ;;  %v1373_v46 = vpop.f32.mrb[6].mxu1 }
  0xfe   : > { %v597_v44 = vpack.c.bf16 %v569_v37, %v568_v36  ;;  %v584_v49 = vmax.f32 %v524_v42, 0.0  ;;  %v527_v50 = vadd.f32 %v1373_v46, %v1801_v0  ;;  %v518_v51 = vpop.f32.mrb[7].mxu1 }
  0xff   : > { %v596_v47 = vpack.c.bf16 %v567_v41, %v566_v40  ;;  %v1360_v48 = vpop.f32.mrb[8].mxu0  ;;  %v582_v54 = vmax.f32 %v516_v45, 0.0  ;;  %v519_v55 = vadd.f32 %v1801_v0, %v518_v51 }
 0x100   : > { %v476_v52 = vadd.f32 %v1360_v48, %v1801_v0  ;;  %v467_v53 = vpop.f32.mrb[9].mxu0  ;;  %v585_v58 = vmax.f32 %v527_v50, 0.0 }
 0x101   : > { %v468_v56 = vadd.f32 %v1801_v0, %v467_v53  ;;  %v1361_v57 = vpop.f32.mrb[10].mxu0  ;;  %1402 = vmatprep.mubr.bf16.mxu1 %v596_v47  ;;  %v583_v61 = vmax.f32 %v519_v55, 0.0 }
 0x102   : > { %v479_v59 = vadd.f32 %v1361_v57, %v1801_v0  ;;  %v470_v60 = vpop.f32.mrb[11].mxu0  ;;  %1403 = vmatmul.mubr.bf16.gmra.mrb[20].mxu1 %v597_v44  ;;  %v605_v63 = vpack.c.bf16 %v585_v58, %v584_v49  ;;  %v572_v1 = vmax.f32 %v476_v52, 0.0 }
 0x103   : > { %v471_v62 = vadd.f32 %v1801_v0, %v470_v60  ;;  %v604_v3 = vpack.c.bf16 %v583_v61, %v582_v54  ;;  %v1376_v4 = vpop.f32.mrb[8].mxu1  ;;  %v570_v5 = vmax.f32 %v468_v56, 0.0 }
 0x104   : > { %v573_v2 = vmax.f32 %v479_v59, 0.0  ;;  %v540_v7 = vadd.f32 %v1376_v4, %v1801_v0  ;;  %v531_v8 = vpop.f32.mrb[9].mxu1 }
 0x105   : > { %v571_v6 = vmax.f32 %v471_v62, 0.0  ;;  %v532_v10 = vadd.f32 %v1801_v0, %v531_v8  ;;  %v1377_v11 = vpop.f32.mrb[10].mxu1 }
 0x106   : > { %v599_v9 = vpack.c.bf16 %v573_v2, %v572_v1  ;;  %v588_v14 = vmax.f32 %v540_v7, 0.0  ;;  %v543_v15 = vadd.f32 %v1377_v11, %v1801_v0  ;;  %v534_v16 = vpop.f32.mrb[11].mxu1 }
 0x107   : > { %v598_v12 = vpack.c.bf16 %v571_v6, %v570_v5  ;;  %v1364_v13 = vpop.f32.mrb[12].mxu0  ;;  %v586_v19 = vmax.f32 %v532_v10, 0.0  ;;  %v535_v20 = vadd.f32 %v1801_v0, %v534_v16 }
 0x108   : > { %v492_v17 = vadd.f32 %v1364_v13, %v1801_v0  ;;  %v483_v18 = vpop.f32.mrb[13].mxu0  ;;  %v589_v23 = vmax.f32 %v543_v15, 0.0 }
 0x109   : > { %v484_v21 = vadd.f32 %v1801_v0, %v483_v18  ;;  %v1365_v22 = vpop.f32.mrb[14].mxu0  ;;  %1406 = vmatprep.mubr.bf16.mxu1 %v598_v12  ;;  %v587_v26 = vmax.f32 %v535_v20, 0.0 }
 0x10a   : > { %v495_v24 = vadd.f32 %v1365_v22, %v1801_v0  ;;  %v486_v25 = vpop.f32.mrb[15].mxu0  ;;  %1407 = vmatmul.mubr.bf16.gmra.mrb[24].mxu1 %v599_v9  ;;  %v607_v28 = vpack.c.bf16 %v589_v23, %v588_v14  ;;  %v576_v29 = vmax.f32 %v492_v17, 0.0 }
 0x10b   : > { %v487_v27 = vadd.f32 %v1801_v0, %v486_v25  ;;  %v606_v31 = vpack.c.bf16 %v587_v26, %v586_v19  ;;  %v1380_v32 = vpop.f32.mrb[12].mxu1  ;;  %v574_v33 = vmax.f32 %v484_v21, 0.0 }
 0x10c   : > { %v577_v30 = vmax.f32 %v495_v24, 0.0  ;;  %v556_v36 = vadd.f32 %v1380_v32, %v1801_v0  ;;  %v547_v37 = vpop.f32.mrb[13].mxu1 }
 0x10d   : > { %v575_v34 = vmax.f32 %v487_v27, 0.0  ;;  %v548_v40 = vadd.f32 %v1801_v0, %v547_v37  ;;  %v1381_v41 = vpop.f32.mrb[14].mxu1 }
 0x10e   : > { %v601_v39 = vpack.c.bf16 %v577_v30, %v576_v29  ;;  %v592_v43 = vmax.f32 %v556_v36, 0.0  ;;  %v559_v44 = vadd.f32 %v1381_v41, %v1801_v0  ;;  %v550_v45 = vpop.f32.mrb[15].mxu1 }
 0x10f   : > { %v600_v42 = vpack.c.bf16 %v575_v34, %v574_v33  ;;  %v590_v46 = vmax.f32 %v548_v40, 0.0  ;;  %v551_v47 = vadd.f32 %v1801_v0, %v550_v45  ;;  %v1539_v0 = vld [vmem:[%s2015_s5 + $0x30] sm:$0xff]  }
 0x110   : > { %v593_v48 = vmax.f32 %v559_v44, 0.0  ;;  %1442 = vmatprep.subr.bf16.mxu0 %v1539_v0 }
 0x111   : > { %1410 = vmatprep.mubr.bf16.mxu1 %v600_v42  ;;  %v591_v49 = vmax.f32 %v551_v47, 0.0  ;;  %1443 = vmatpush3.bf16.msra.mxu0 %v1539_v0 }
 0x112   : > { %1411 = vmatmul.mubr.bf16.gmra.mrb[28].mxu1 %v601_v39  ;;  %v609_v50 = vpack.c.bf16 %v593_v48, %v592_v43 }
 0x113   : > { %1414 = vmatprep.mubr.bf16.mxu1 %v1817_v38  ;;  %v608_v51 = vpack.c.bf16 %v591_v49, %v590_v46  ;;  %v1540_v38 = vld [vmem:[%s2015_s5 + $0x38] sm:$0xff]  }
 0x114   : > { %1444 = vmatprep.subr.bf16.mxu0 %v1540_v38 }
 0x115   : > { %1445 = vmatpush3.bf16.msra.mxu0 %v1540_v38 }
 0x11a   : > { %1415 = vmatmul.mubr.bf16.gmra.mrb[32].mxu1 %v1815_v35  ;;  %v1850_v35 = vld [vmem:[%s2014_s4] ss:$0 sm:$0xff] }
 0x11b   : > { %1418 = vmatprep.mubr.bf16.mxu1 %v604_v3 }
 0x122   : > { %1419 = vmatmul.mubr.bf16.gmra.mrb[36].mxu1 %v605_v63 }
 0x123   : > { %1422 = vmatprep.mubr.bf16.mxu1 %v606_v31 }
 0x12a   : > { %1423 = vmatmul.mubr.bf16.gmra.mrb[40].mxu1 %v607_v28 }
 0x12b   : > { %1426 = vmatprep.mubr.bf16.mxu1 %v608_v51 }
 0x132   : > { %1427 = vmatmul.mubr.bf16.gmra.mrb[44].mxu1 %v609_v50 }
 0x1cd   : > { %v1400_v52 = vpop.f32.mrb[16].mxu1 }
 0x1ce   : > { %v724_v53 = vadd.f32 %v1400_v52, %v1850_v35  ;;  %v715_v54 = vpop.f32.mrb[17].mxu1 }
 0x1cf   : > { %v716_v55 = vadd.f32 %v1850_v35, %v715_v54  ;;  %v1401_v56 = vpop.f32.mrb[18].mxu1 }
 0x1d0   : > { %v727_v57 = vadd.f32 %v1401_v56, %v1850_v35  ;;  %v718_v58 = vpop.f32.mrb[19].mxu1  ;;  %v844_v60 = vmax.f32 %v724_v53, 0.0 }
 0x1d1   : > { %v719_v59 = vadd.f32 %v1850_v35, %v718_v58  ;;  %v842_v62 = vmax.f32 %v716_v55, 0.0 }
 0x1d2   : > { %v845_v61 = vmax.f32 %v727_v57, 0.0 }
 0x1d3   : > { %v843_v63 = vmax.f32 %v719_v59, 0.0 }
 0x1d4   : > { %v875_v1 = vpack.c.bf16 %v845_v61, %v844_v60 }
 0x1d5   : > { %v874_v2 = vpack.c.bf16 %v843_v63, %v842_v62  ;;  %v1404_v3 = vpop.f32.mrb[20].mxu1 }
 0x1d6   : > { %v740_v4 = vadd.f32 %v1404_v3, %v1850_v35  ;;  %v731_v5 = vpop.f32.mrb[21].mxu1 }
 0x1d7   : > { %v732_v6 = vadd.f32 %v1850_v35, %v731_v5  ;;  %v1405_v7 = vpop.f32.mrb[22].mxu1  ;;  %1446 = vmatprep.mubr.bf16.mxu0 %v874_v2 }
 0x1d8   : > { %v743_v8 = vadd.f32 %v1405_v7, %v1850_v35  ;;  %v734_v9 = vpop.f32.mrb[23].mxu1  ;;  %1447 = vmatmul.mubr.bf16.vlgmr.msra.gmra.mrb[16].mxu0 %v875_v1  ;;  %v848_v11 = vmax.f32 %v740_v4, 0.0 }
 0x1d9   : > { %v735_v10 = vadd.f32 %v1850_v35, %v734_v9  ;;  %v846_v13 = vmax.f32 %v732_v6, 0.0 }
 0x1da   : > { %v849_v12 = vmax.f32 %v743_v8, 0.0 }
 0x1db   : > { %v847_v14 = vmax.f32 %v735_v10, 0.0 }
 0x1dc   : > { %v877_v15 = vpack.c.bf16 %v849_v12, %v848_v11 }
 0x1dd   : > { %v876_v16 = vpack.c.bf16 %v847_v14, %v846_v13  ;;  %v1408_v17 = vpop.f32.mrb[24].mxu1 }
 0x1de   : > { %v756_v18 = vadd.f32 %v1408_v17, %v1850_v35  ;;  %v747_v19 = vpop.f32.mrb[25].mxu1 }
 0x1df   : > { %v748_v20 = vadd.f32 %v1850_v35, %v747_v19  ;;  %v1409_v21 = vpop.f32.mrb[26].mxu1  ;;  %1450 = vmatprep.mubr.bf16.mxu0 %v876_v16 }
 0x1e0   : > { %v759_v22 = vadd.f32 %v1409_v21, %v1850_v35  ;;  %v750_v23 = vpop.f32.mrb[27].mxu1  ;;  %1451 = vmatmul.mubr.bf16.gmra.mrb[20].mxu0 %v877_v15  ;;  %v852_v25 = vmax.f32 %v756_v18, 0.0 }
 0x1e1   : > { %v751_v24 = vadd.f32 %v1850_v35, %v750_v23  ;;  %v850_v27 = vmax.f32 %v748_v20, 0.0 }
 0x1e2   : > { %v853_v26 = vmax.f32 %v759_v22, 0.0 }
 0x1e3   : > { %v851_v28 = vmax.f32 %v751_v24, 0.0 }
 0x1e4   : > { %v879_v29 = vpack.c.bf16 %v853_v26, %v852_v25 }
 0x1e5   : > { %v878_v30 = vpack.c.bf16 %v851_v28, %v850_v27  ;;  %v1412_v31 = vpop.f32.mrb[28].mxu1 }
 0x1e6   : > { %v772_v32 = vadd.f32 %v1412_v31, %v1850_v35  ;;  %v763_v33 = vpop.f32.mrb[29].mxu1 }
 0x1e7   : > { %v764_v34 = vadd.f32 %v1850_v35, %v763_v33  ;;  %v1413_v36 = vpop.f32.mrb[30].mxu1  ;;  %1454 = vmatprep.mubr.bf16.mxu0 %v878_v30 }
 0x1e8   : > { %v775_v37 = vadd.f32 %v1413_v36, %v1850_v35  ;;  %v766_v39 = vpop.f32.mrb[31].mxu1  ;;  %1455 = vmatmul.mubr.bf16.gmra.mrb[24].mxu0 %v879_v29  ;;  %v856_v41 = vmax.f32 %v772_v32, 0.0 }
 0x1e9   : > { %v767_v40 = vadd.f32 %v1850_v35, %v766_v39  ;;  %v854_v43 = vmax.f32 %v764_v34, 0.0 }
 0x1ea   : > { %v857_v42 = vmax.f32 %v775_v37, 0.0 }
 0x1eb   : > { %v855_v44 = vmax.f32 %v767_v40, 0.0  ;;  %v1890_v40 = vld [vmem:[%s2016_s6] ss:$0 sm:$0xff] }
 0x1ec   : > { %v881_v45 = vpack.c.bf16 %v857_v42, %v856_v41 }
 0x1ed   : > { %v880_v46 = vpack.c.bf16 %v855_v44, %v854_v43  ;;  %v1416_v47 = vpop.f32.mrb[32].mxu1 }
 0x1ee   : > { %v788_v48 = vadd.f32 %v1416_v47, %v1850_v35  ;;  %v779_v49 = vpop.f32.mrb[33].mxu1 }
 0x1ef   : > { %v780_v50 = vadd.f32 %v1850_v35, %v779_v49  ;;  %v1417_v51 = vpop.f32.mrb[34].mxu1  ;;  %1458 = vmatprep.mubr.bf16.mxu0 %v880_v46 }
 0x1f0   : > { %v791_v0 = vadd.f32 %v1417_v51, %v1850_v35  ;;  %v782_v38 = vpop.f32.mrb[35].mxu1  ;;  %1459 = vmatmul.mubr.bf16.gmra.mrb[28].mxu0 %v881_v45  ;;  %v860_v53 = vmax.f32 %v788_v48, 0.0 }
 0x1f1   : > { %v783_v52 = vadd.f32 %v1850_v35, %v782_v38  ;;  %v858_v55 = vmax.f32 %v780_v50, 0.0 }
 0x1f2   : > { %v861_v54 = vmax.f32 %v791_v0, 0.0 }
 0x1f3   : > { %v859_v56 = vmax.f32 %v783_v52, 0.0 }
 0x1f4   : > { %v883_v57 = vpack.c.bf16 %v861_v54, %v860_v53 }
 0x1f5   : > { %v882_v58 = vpack.c.bf16 %v859_v56, %v858_v55  ;;  %v1420_v59 = vpop.f32.mrb[36].mxu1 }
 0x1f6   : > { %v804_v60 = vadd.f32 %v1420_v59, %v1850_v35  ;;  %v795_v61 = vpop.f32.mrb[37].mxu1 }
 0x1f7   : > { %v796_v62 = vadd.f32 %v1850_v35, %v795_v61  ;;  %v1421_v63 = vpop.f32.mrb[38].mxu1  ;;  %1462 = vmatprep.mubr.bf16.mxu0 %v882_v58 }
 0x1f8   : > { %v807_v1 = vadd.f32 %v1421_v63, %v1850_v35  ;;  %v798_v2 = vpop.f32.mrb[39].mxu1  ;;  %1463 = vmatmul.mubr.bf16.gmra.mrb[32].mxu0 %v883_v57  ;;  %v864_v4 = vmax.f32 %v804_v60, 0.0 }
 0x1f9   : > { %v799_v3 = vadd.f32 %v1850_v35, %v798_v2  ;;  %v862_v6 = vmax.f32 %v796_v62, 0.0 }
 0x1fa   : > { %v865_v5 = vmax.f32 %v807_v1, 0.0 }
 0x1fb   : > { %v863_v7 = vmax.f32 %v799_v3, 0.0 }
 0x1fc   : > { %v885_v8 = vpack.c.bf16 %v865_v5, %v864_v4 }
 0x1fd   : > { %v884_v9 = vpack.c.bf16 %v863_v7, %v862_v6  ;;  %v1424_v10 = vpop.f32.mrb[40].mxu1 }
 0x1fe   : > { %v820_v11 = vadd.f32 %v1424_v10, %v1850_v35  ;;  %v811_v12 = vpop.f32.mrb[41].mxu1 }
 0x1ff   : > { %v812_v13 = vadd.f32 %v1850_v35, %v811_v12  ;;  %v1425_v14 = vpop.f32.mrb[42].mxu1  ;;  %1466 = vmatprep.mubr.bf16.mxu0 %v884_v9 }
 0x200   : > { %v823_v15 = vadd.f32 %v1425_v14, %v1850_v35  ;;  %v814_v16 = vpop.f32.mrb[43].mxu1  ;;  %1467 = vmatmul.mubr.bf16.gmra.mrb[36].mxu0 %v885_v8  ;;  %v868_v18 = vmax.f32 %v820_v11, 0.0 }
 0x201   : > { %v815_v17 = vadd.f32 %v1850_v35, %v814_v16  ;;  %v866_v20 = vmax.f32 %v812_v13, 0.0 }
 0x202   : > { %v869_v19 = vmax.f32 %v823_v15, 0.0 }
 0x203   : > { %v867_v21 = vmax.f32 %v815_v17, 0.0 }
 0x204   : > { %v887_v22 = vpack.c.bf16 %v869_v19, %v868_v18 }
 0x205   : > { %v886_v23 = vpack.c.bf16 %v867_v21, %v866_v20  ;;  %v1428_v24 = vpop.f32.mrb[44].mxu1 }
 0x206   : > { %v836_v25 = vadd.f32 %v1428_v24, %v1850_v35  ;;  %v827_v26 = vpop.f32.mrb[45].mxu1 }
 0x207   : > { %v828_v27 = vadd.f32 %v1850_v35, %v827_v26  ;;  %v1429_v28 = vpop.f32.mrb[46].mxu1  ;;  %1470 = vmatprep.mubr.bf16.mxu0 %v886_v23 }
 0x208   : > { %v839_v29 = vadd.f32 %v1429_v28, %v1850_v35  ;;  %v830_v30 = vpop.f32.mrb[47].mxu1  ;;  %1471 = vmatmul.mubr.bf16.gmra.mrb[40].mxu0 %v887_v22  ;;  %v872_v32 = vmax.f32 %v836_v25, 0.0 }
 0x209   : > { %v831_v31 = vadd.f32 %v1850_v35, %v830_v30  ;;  %v870_v34 = vmax.f32 %v828_v27, 0.0 }
 0x20a   : > { %v873_v33 = vmax.f32 %v839_v29, 0.0 }
 0x20b   : > { %v871_v36 = vmax.f32 %v831_v31, 0.0 }
 0x20c   : > { %v889_v37 = vpack.c.bf16 %v873_v33, %v872_v32 }
 0x20d   : > { %v888_v39 = vpack.c.bf16 %v871_v36, %v870_v34 }
 0x20f   : > { %1474 = vmatprep.mubr.bf16.mxu0 %v888_v39 }
 0x210   : > { %1475 = vmatmul.mubr.bf16.gmra.mrb[44].mxu0 %v889_v37 }
 0x2ab   : > { %v1448_v41 = vpop.f32.mrb[16].mxu0 }
 0x2ac   : > { %v1004_v42 = vadd.f32 %v1448_v41, %v1890_v40  ;;  %v995_v35 = vpop.f32.mrb[17].mxu0 }
 0x2ad   : > { %v996_v43 = vadd.f32 %v1890_v40, %v995_v35  ;;  %v1449_v44 = vpop.f32.mrb[18].mxu0 }
 0x2ae   : > { %1124 = vst [vmem:[%s1894_s20 + $0x10] sm:$0xff] %v1004_v42  ;;  %v1007_v45 = vadd.f32 %v1449_v44, %v1890_v40  ;;  %v998_v46 = vpop.f32.mrb[19].mxu0 }
 0x2af   : > { %1122 = vst [vmem:[%s1894_s20] sm:$0xff] %v996_v43  ;;  %v999_v47 = vadd.f32 %v1890_v40, %v998_v46 }
 0x2b0   : > { %1125 = vst [vmem:[%s1894_s20 + $0x18] sm:$0xff] %v1007_v45 }
 0x2b1   : > { %1123 = vst [vmem:[%s1894_s20 + $0x8] sm:$0xff] %v999_v47 }
 0x2b3   : > { %v1452_v48 = vpop.f32.mrb[20].mxu0 }
 0x2b4   : > { %v1020_v49 = vadd.f32 %v1452_v48, %v1890_v40  ;;  %v1011_v50 = vpop.f32.mrb[21].mxu0 }
 0x2b5   : > { %v1012_v51 = vadd.f32 %v1890_v40, %v1011_v50  ;;  %v1453_v0 = vpop.f32.mrb[22].mxu0 }
 0x2b6   : > { %1128 = vst [vmem:[%s1894_s20 + $0x30] sm:$0xff] %v1020_v49  ;;  %v1023_v38 = vadd.f32 %v1453_v0, %v1890_v40  ;;  %v1014_v52 = vpop.f32.mrb[23].mxu0 }
 0x2b7   : > { %1126 = vst [vmem:[%s1894_s20 + $0x20] sm:$0xff] %v1012_v51  ;;  %v1015_v53 = vadd.f32 %v1890_v40, %v1014_v52 }
 0x2b8   : > { %1129 = vst [vmem:[%s1894_s20 + $0x38] sm:$0xff] %v1023_v38 }
 0x2b9   : > { %1127 = vst [vmem:[%s1894_s20 + $0x28] sm:$0xff] %v1015_v53 }
 0x2bb   : > { %v1456_v54 = vpop.f32.mrb[24].mxu0 }
 0x2bc   : > { %v1036_v55 = vadd.f32 %v1456_v54, %v1890_v40  ;;  %v1027_v56 = vpop.f32.mrb[25].mxu0 }
 0x2bd   : > { %v1028_v57 = vadd.f32 %v1890_v40, %v1027_v56  ;;  %v1457_v58 = vpop.f32.mrb[26].mxu0 }
 0x2be   : > { %1132 = vst [vmem:[%s1894_s20 + $0x50] sm:$0xff] %v1036_v55  ;;  %v1039_v59 = vadd.f32 %v1457_v58, %v1890_v40  ;;  %v1030_v60 = vpop.f32.mrb[27].mxu0 }
 0x2bf   : > { %1130 = vst [vmem:[%s1894_s20 + $0x40] sm:$0xff] %v1028_v57  ;;  %v1031_v61 = vadd.f32 %v1890_v40, %v1030_v60 }
 0x2c0   : > { %1133 = vst [vmem:[%s1894_s20 + $0x58] sm:$0xff] %v1039_v59 }
 0x2c1   : > { %1131 = vst [vmem:[%s1894_s20 + $0x48] sm:$0xff] %v1031_v61 }
 0x2c3   : > { %v1460_v62 = vpop.f32.mrb[28].mxu0 }
 0x2c4   : > { %v1052_v63 = vadd.f32 %v1460_v62, %v1890_v40  ;;  %v1043_v1 = vpop.f32.mrb[29].mxu0 }
 0x2c5   : > { %v1044_v2 = vadd.f32 %v1890_v40, %v1043_v1  ;;  %v1461_v3 = vpop.f32.mrb[30].mxu0 }
 0x2c6   : > { %1136 = vst [vmem:[%s1894_s20 + $0x70] sm:$0xff] %v1052_v63  ;;  %v1055_v4 = vadd.f32 %v1461_v3, %v1890_v40  ;;  %v1046_v5 = vpop.f32.mrb[31].mxu0 }
 0x2c7   : > { %1134 = vst [vmem:[%s1894_s20 + $0x60] sm:$0xff] %v1044_v2  ;;  %v1047_v6 = vadd.f32 %v1890_v40, %v1046_v5 }
 0x2c8   : > { %1137 = vst [vmem:[%s1894_s20 + $0x78] sm:$0xff] %v1055_v4 }
 0x2c9   : > { %1135 = vst [vmem:[%s1894_s20 + $0x68] sm:$0xff] %v1047_v6 }
 0x2cb   : > { %v1464_v7 = vpop.f32.mrb[32].mxu0 }
 0x2cc   : > { %v1068_v8 = vadd.f32 %v1464_v7, %v1890_v40  ;;  %v1059_v9 = vpop.f32.mrb[33].mxu0 }
 0x2cd   : > { %v1060_v10 = vadd.f32 %v1890_v40, %v1059_v9  ;;  %v1465_v11 = vpop.f32.mrb[34].mxu0 }
 0x2ce   : > { %1140 = vst [vmem:[%s1894_s20 + $0x90] sm:$0xff] %v1068_v8  ;;  %v1071_v12 = vadd.f32 %v1465_v11, %v1890_v40  ;;  %v1062_v13 = vpop.f32.mrb[35].mxu0 }
 0x2cf   : > { %1138 = vst [vmem:[%s1894_s20 + $0x80] sm:$0xff] %v1060_v10  ;;  %v1063_v14 = vadd.f32 %v1890_v40, %v1062_v13 }
 0x2d0   : > { %1141 = vst [vmem:[%s1894_s20 + $0x98] sm:$0xff] %v1071_v12 }
 0x2d1   : > { %1139 = vst [vmem:[%s1894_s20 + $0x88] sm:$0xff] %v1063_v14 }
 0x2d3   : > { %v1468_v15 = vpop.f32.mrb[36].mxu0 }
 0x2d4   : > { %v1084_v16 = vadd.f32 %v1468_v15, %v1890_v40  ;;  %v1075_v17 = vpop.f32.mrb[37].mxu0 }
 0x2d5   : > { %v1076_v18 = vadd.f32 %v1890_v40, %v1075_v17  ;;  %v1469_v19 = vpop.f32.mrb[38].mxu0 }
 0x2d6   : > { %1144 = vst [vmem:[%s1894_s20 + $0xb0] sm:$0xff] %v1084_v16  ;;  %v1087_v20 = vadd.f32 %v1469_v19, %v1890_v40  ;;  %v1078_v21 = vpop.f32.mrb[39].mxu0 }
 0x2d7   : > { %1142 = vst [vmem:[%s1894_s20 + $0xa0] sm:$0xff] %v1076_v18  ;;  %v1079_v22 = vadd.f32 %v1890_v40, %v1078_v21 }
 0x2d8   : > { %1145 = vst [vmem:[%s1894_s20 + $0xb8] sm:$0xff] %v1087_v20 }
 0x2d9   : > { %1143 = vst [vmem:[%s1894_s20 + $0xa8] sm:$0xff] %v1079_v22 }
 0x2db   : > { %v1472_v23 = vpop.f32.mrb[40].mxu0 }
 0x2dc   : > { %v1100_v24 = vadd.f32 %v1472_v23, %v1890_v40  ;;  %v1091_v25 = vpop.f32.mrb[41].mxu0 }
 0x2dd   : > { %v1092_v26 = vadd.f32 %v1890_v40, %v1091_v25  ;;  %v1473_v27 = vpop.f32.mrb[42].mxu0 }
 0x2de   : > { %1148 = vst [vmem:[%s1894_s20 + $0xd0] sm:$0xff] %v1100_v24  ;;  %v1103_v28 = vadd.f32 %v1473_v27, %v1890_v40  ;;  %v1094_v29 = vpop.f32.mrb[43].mxu0 }
 0x2df   : > { %1146 = vst [vmem:[%s1894_s20 + $0xc0] sm:$0xff] %v1092_v26  ;;  %v1095_v30 = vadd.f32 %v1890_v40, %v1094_v29 }
 0x2e0   : > { %1149 = vst [vmem:[%s1894_s20 + $0xd8] sm:$0xff] %v1103_v28 }
 0x2e1   : > { %1147 = vst [vmem:[%s1894_s20 + $0xc8] sm:$0xff] %v1095_v30 }
 0x2e3   : > { %v1476_v31 = vpop.f32.mrb[44].mxu0 }
 0x2e4   : > { %v1116_v32 = vadd.f32 %v1476_v31, %v1890_v40  ;;  %v1107_v33 = vpop.f32.mrb[45].mxu0 }
 0x2e5   : > { %v1108_v34 = vadd.f32 %v1890_v40, %v1107_v33  ;;  %v1477_v36 = vpop.f32.mrb[46].mxu0 }
 0x2e6   : > { %1152 = vst [vmem:[%s1894_s20 + $0xf0] sm:$0xff] %v1116_v32  ;;  %v1119_v37 = vadd.f32 %v1477_v36, %v1890_v40  ;;  %v1110_v39 = vpop.f32.mrb[47].mxu0 }
 0x2e7   : > { %1150 = vst [vmem:[%s1894_s20 + $0xe0] sm:$0xff] %v1108_v34  ;;  %v1111_v41 = vadd.f32 %v1890_v40, %v1110_v39 }
 0x2e8   : > { %1153 = vst [vmem:[%s1894_s20 + $0xf8] sm:$0xff] %v1119_v37 }
 0x2e9   : > { %1151 = vst [vmem:[%s1894_s20 + $0xe8] sm:$0xff] %v1111_v41 }
 0x2ea   : > { %1554 = shalt.err (!%p1551_p3)
}
 0x2eb   : > { %s1555_s16 = scalar_lea.hbm %s1959_s8, 4096  ;;  %s1559_s19 = scalar_lea.hbm %s2017_s7, 8192 }
 0x2ec   : > { %p1556_p4 = scmp.ne.s32.totalorder %s1959_s8, %s1555_s16  ;;  %p1560_p9 = scmp.lt.u32.totalorder %s1959_s8, %s2017_s7 }
 0x2ed   : > { %p1561_p10 = scmp.lt.u32.totalorder %s1559_s19, %s1555_s16  ;;  %p1563_p12 = scmp.lt.u32.totalorder %s1555_s16, %s1959_s8 }
 0x2ee   : > { %p1557_p7 = pnand %p1556_p4, %p1686_p5 }
 0x2ef   : > { %p1562_p11 = por %p1561_p10, %p1560_p9 }
 0x2f0   : > { %p1558_p8 = pneg %p1557_p7 }
 0x2f1   : > { %p1564_p13 = por %p1563_p12, %p1562_p11 }
 0x2f3   : > { %p1565_p0 = pnand %p1564_p13, %p1558_p8 }
 0x2f5   : > { %1568 = shalt.err (!%p1565_p0)
}
 0x2f6   : > { %s1606_s29 = smov 128   ;;  %s1607_s23 = smov 8  }
 0x2f7   : > { %1482 = dma.vmem_to_hbm [thread:$0]  (%p1686_p5), %s1961_s22, 4096, %s1959_s8, %s1969_s28, %s1606_s29, %s1606_s29, %s1607_s23  }
 0x2f8 PF: > { %p1488_p1 = scmp.ge.s32.totalorder %s1603_s27, 2  ;;  %s1183_s9 = sand.u32 1, %s1591_s24  }
 0x2f9   : > { %s1184_s13 = scalar_lea.sflag [#allocation3], %s1183_s9 }
 0x2fa   : > { %p1485_p2 = pnand %p1488_p1, %p1690_p6 }
 0x2fc   : > { %1586 = dma.done.wait (!%p1485_p2), %s1184_s13, 4096  }
 0x2fd   : > { %1588 = vsyncadd (!%p1485_p2), %s1184_s13, 4294963200  ;;  %p17_p3 = scmp.ge.s32.totalorder %s1673_s30, 4   ;;  %s2020_s24 = smov %s1595_s25 }
 0x2fe   : > { %s2021_s25 = smov %s1599_s26  ;;  %s2022_s26 = smov %s1684_s10 }
 0x2ff   : > { %s2023_s27 = smov %s1673_s30  ;;  %19 = sbr.rel (!%p17_p3) target bundleno = 3 (0x3), region = 83 }
 0x306   :  { %1189 = vsyncpa [#allocation3], 1 }
 0x307   :  { %1191 = vsyncpa [#allocation3 + $0x1], 1 }

</bundles_post_ra>
